<compile_context>
chip_gen: v7x
topology: tpu7x:2x2x1
jax: 0.10.0
libtpu: 0.0.40
codegen_flags: <defaults>
</compile_context>

<pallas_src>
import functools

import jax
import jax.numpy as jnp
from jax.experimental import pallas as pl
from jax.experimental.pallas import tpu as pltpu

_LANE = 128


def _round_up(n, m):
    return ((n + m - 1) // m) * m


def _cdiv(a, b):
    return -(-a // b)


def _pad2(a, rows, cols):
    r, c = a.shape
    return jnp.pad(a, ((0, rows - r), (0, cols - c)))


def _env_model_kernel(feat_ref, act_ref,
                      w1f_ref, w1a_ref, b1_ref,
                      w2_ref, b2_ref,
                      wh_ref, bh_ref,
                      out_ref, *, done_col):
    """Fused 2-layer ReLU MLP + concatenated heads; sigmoid on the done column."""
    feat = feat_ref[...]                                  # (tb, feat_dim) f32, unpadded lanes
    tb = feat.shape[0]
    h_pad = b1_ref.shape[-1]

    # ---- layer 1 ------------------------------------------------------------
    # State contribution: feat_dim is tiny (state[+action] features), so do an
    # unrolled outer-product accumulation on the VPU instead of a skinny-K MXU
    # matmul.  (For large state_dim this should switch back to jnp.dot.)
    acc = jnp.zeros((tb, h_pad), jnp.float32)
    for k in range(feat.shape[1]):
        acc = acc + feat[:, k:k + 1] * w1f_ref[k:k + 1, :]

    # Action contribution: build the one-hot in-kernel (exact in bf16) and hit
    # the MXU once; equivalent to a row gather of W1_action.
    a_idx = act_ref[...]                                  # (tb, 1) int32
    a_pad = w1a_ref.shape[0]
    lane = jax.lax.broadcasted_iota(jnp.int32, (tb, a_pad), 1)
    onehot = (lane == a_idx).astype(jnp.bfloat16)
    acc = acc + jnp.dot(onehot, w1a_ref[...], preferred_element_type=jnp.float32)

    h1 = jnp.maximum(acc + b1_ref[...], 0.0).astype(jnp.bfloat16)

    # ---- layer 2 ------------------------------------------------------------
    h2 = jnp.dot(h1, w2_ref[...], preferred_element_type=jnp.float32) + b2_ref[...]
    h2 = jnp.maximum(h2, 0.0).astype(jnp.bfloat16)

    # ---- fused heads: [next_state | reward | done] --------------------------
    y = jnp.dot(h2, wh_ref[...], preferred_element_type=jnp.float32) + bh_ref[...]

    # Sigmoid only on the done column: EUP work on tb elements, not tb*128;
    # the select mask is a (1, head_pad) iota broadcast down the rows.
    done = jax.nn.sigmoid(y[:, done_col:done_col + 1])
    col = jax.lax.broadcasted_iota(jnp.int32, (1, y.shape[1]), 1)
    y = jnp.where(col == done_col, done, y)

    out_ref[...] = y.astype(out_ref.dtype)                # lane-dense bf16 store


def init_env_model_params(key, state_dim, action_dim, hidden_dim=128):
    """Deterministic synthetic init.  Weights stored (in, out) == W.T of nn.Linear."""
    input_dim = state_dim + action_dim
    keys = jax.random.split(key, 10)

    def lin(kw, kb, fan_in, fan_out):
        bound = 1.0 / jnp.sqrt(fan_in)
        w = jax.random.uniform(kw, (fan_in, fan_out), jnp.float32, -bound, bound)
        b = jax.random.uniform(kb, (1, fan_out), jnp.float32, -bound, bound)
        return w, b

    w1, b1 = lin(keys[0], keys[1], input_dim, hidden_dim)
    w2, b2 = lin(keys[2], keys[3], hidden_dim, hidden_dim)
    wns, bns = lin(keys[4], keys[5], hidden_dim, state_dim)
    wr, br = lin(keys[6], keys[7], hidden_dim, 1)
    wd, bd = lin(keys[8], keys[9], hidden_dim, 1)
    return dict(w1=w1, b1=b1, w2=w2, b2=b2,
                wns=wns, bns=bns, wr=wr, br=br, wd=wd, bd=bd)


def environment_model_forward(params, state, action, state_dim, action_dim,
                              tile_b=1024):
    """Runs the fused Pallas MLP kernel.

    Returns (next_state [B, state_dim], reward [B, 1], done_prob [B, 1]).
    """
    state = state.astype(jnp.float32)
    batch = state.shape[0]
    hidden = params["w1"].shape[1]
    in_dim = state_dim + action_dim
    head_dim = state_dim + 2                       # [next_state | reward | done]

    a_pad = _round_up(action_dim, _LANE)
    h_pad = _round_up(hidden, _LANE)
    head_pad = _round_up(head_dim, _LANE)

    # ---- batch tiling: big tiles, bounded padding waste, >=2 steps when large.
    b_min = _round_up(batch, 16)                   # 16 rows for bf16 sublane packing
    n_tiles = max(1, _cdiv(b_min, tile_b))
    if b_min >= 512:
        n_tiles = max(n_tiles, 2)                  # give both v7x TCs work
    tb = _round_up(_cdiv(b_min, n_tiles), 16)
    b_pad = tb * n_tiles

    # ---- layer-1 operands (no padded-x materialization) ---------------------
    if action.ndim == 1:
        feat = state                                           # (B, state_dim)
        act_idx = action.astype(jnp.int32).reshape(batch, 1)
        w1f = params["w1"][:state_dim]                         # state rows of W1
        w1a = params["w1"][state_dim:state_dim + action_dim]   # action rows of W1
    else:
        # Pre-featurized action matrix (PyTorch `else` branch): fold it into the
        # unpadded feature block; the one-hot path selects a zero row.
        feat = jnp.concatenate([state, action.astype(jnp.float32)], axis=-1)
        act_idx = jnp.zeros((batch, 1), jnp.int32)
        w1f = params["w1"][:in_dim]
        w1a = jnp.zeros((action_dim, hidden), jnp.float32)
    feat_dim = feat.shape[1]

    feat_p = jnp.pad(feat, ((0, b_pad - batch), (0, 0)))       # (b_pad, feat_dim) f32
    act_p = jnp.pad(act_idx, ((0, b_pad - batch), (0, 0)))     # (b_pad, 1) int32

    w1f_p = _pad2(w1f, feat_dim, h_pad)                        # f32, tiny K
    w1a_p = _pad2(w1a, a_pad, h_pad).astype(jnp.bfloat16)
    b1_p = _pad2(params["b1"], 1, h_pad)
    w2_p = _pad2(params["w2"], h_pad, h_pad).astype(jnp.bfloat16)
    b2_p = _pad2(params["b2"], 1, h_pad)
    wh = jnp.concatenate([params["wns"], params["wr"], params["wd"]], axis=1)
    bh = jnp.concatenate([params["bns"], params["br"], params["bd"]], axis=1)
    wh_p = _pad2(wh, h_pad, head_pad).astype(jnp.bfloat16)
    bh_p = _pad2(bh, 1, head_pad)

    grid = (b_pad // tb,)
    kernel = functools.partial(_env_model_kernel, done_col=state_dim + 1)

    out = pl.pallas_call(
        kernel,
        out_shape=jax.ShapeDtypeStruct((b_pad, head_pad), jnp.bfloat16),
        grid_spec=pltpu.PrefetchScalarGridSpec(
            num_scalar_prefetch=0,
            grid=grid,
            in_specs=[
                pl.BlockSpec((tb, feat_dim), lambda i: (i, 0)),     # state feats (streamed)
                pl.BlockSpec((tb, 1), lambda i: (i, 0)),            # action idx  (streamed)
                pl.BlockSpec((feat_dim, h_pad), lambda i: (0, 0)),  # weights stay
                pl.BlockSpec((a_pad, h_pad), lambda i: (0, 0)),     # VMEM-resident
                pl.BlockSpec((1, h_pad), lambda i: (0, 0)),
                pl.BlockSpec((h_pad, h_pad), lambda i: (0, 0)),
                pl.BlockSpec((1, h_pad), lambda i: (0, 0)),
                pl.BlockSpec((h_pad, head_pad), lambda i: (0, 0)),
                pl.BlockSpec((1, head_pad), lambda i: (0, 0)),
            ],
            out_specs=pl.BlockSpec((tb, head_pad), lambda i: (i, 0)),
        ),
        compiler_params=pltpu.CompilerParams(
            dimension_semantics=("parallel",),       # batch steps shard across TCs
            vmem_limit_bytes=32 * 1024 * 1024,       # few MiB needed; safe on v5e/v6e/v7x
        ),
    )(feat_p, act_p, w1f_p, w1a_p, b1_p, w2_p, b2_p, wh_p, bh_p)

    next_state = out[:batch, :state_dim].astype(jnp.float32)
    reward = out[:batch, state_dim:state_dim + 1].astype(jnp.float32)
    done_prob = out[:batch, state_dim + 1:state_dim + 2].astype(jnp.float32)
    return next_state, reward, done_prob


def _reference_forward(params, state, action, action_dim):
    action_onehot = jax.nn.one_hot(action.astype(jnp.int32), action_dim,
                                   dtype=jnp.float32)
    x = jnp.concatenate([state.astype(jnp.float32), action_onehot], axis=-1)
    h1 = jax.nn.relu(x @ params["w1"] + params["b1"])
    h2 = jax.nn.relu(h1 @ params["w2"] + params["b2"])
    ns = h2 @ params["wns"] + params["bns"]
    r = h2 @ params["wr"] + params["br"]
    d = jax.nn.sigmoid(h2 @ params["wd"] + params["bd"])
    return ns, r, d


if __name__ == "__main__":
    STATE_DIM = 8
    ACTION_DIM = 4
    HIDDEN_DIM = 32
    BATCH = 8

    key = jax.random.PRNGKey(0)
    k_params, k_state, k_action = jax.random.split(key, 3)

    params = init_env_model_params(k_params, STATE_DIM, ACTION_DIM, HIDDEN_DIM)
    state = jax.random.normal(k_state, (BATCH, STATE_DIM), jnp.float32)
    action = jax.random.randint(k_action, (BATCH,), 0, ACTION_DIM)

    next_state, reward, done_prob = environment_model_forward(
        params, state, action, STATE_DIM, ACTION_DIM)
    jax.block_until_ready((next_state, reward, done_prob))

    # Correctness vs pure-JAX f32 reference (bf16 MXU/output -> relaxed tolerance).
    ref_ns, ref_r, ref_d = _reference_forward(params, state, action, ACTION_DIM)
    assert next_state.shape == (BATCH, STATE_DIM)
    assert reward.shape == (BATCH, 1)
    assert done_prob.shape == (BATCH, 1)
    assert jnp.allclose(next_state, ref_ns, atol=3e-2, rtol=3e-2)
    assert jnp.allclose(reward, ref_r, atol=3e-2, rtol=3e-2)
    assert jnp.allclose(done_prob, ref_d, atol=3e-2, rtol=3e-2)

    # Also exercise the pre-featurized (2-D) action branch of the original forward.
    action_onehot = jax.nn.one_hot(action, ACTION_DIM, dtype=jnp.float32)
    ns2, r2, d2 = environment_model_forward(params, state, action_onehot,
                                            STATE_DIM, ACTION_DIM)
    jax.block_until_ready((ns2, r2, d2))
    assert jnp.allclose(ns2, ref_ns, atol=3e-2, rtol=3e-2)
    assert jnp.allclose(r2, ref_r, atol=3e-2, rtol=3e-2)
    assert jnp.allclose(d2, ref_d, atol=3e-2, rtol=3e-2)

    print("KERNEL_OK")
</pallas_src>

<mosaic_0001>
module attributes {stable_mosaic.version = 11 : i64} {
  func.func @_env_model_kernel(%arg0: i32, %arg1: memref<16x8xf32, #tpu.memory_space<vmem>>, %arg2: memref<16x1xi32, #tpu.memory_space<vmem>>, %arg3: memref<8x128xf32, #tpu.memory_space<vmem>>, %arg4: memref<128x128xbf16, #tpu.memory_space<vmem>>, %arg5: memref<1x128xf32, #tpu.memory_space<vmem>>, %arg6: memref<128x128xbf16, #tpu.memory_space<vmem>>, %arg7: memref<1x128xf32, #tpu.memory_space<vmem>>, %arg8: memref<128x128xbf16, #tpu.memory_space<vmem>>, %arg9: memref<1x128xf32, #tpu.memory_space<vmem>>, %arg10: memref<16x128xbf16, #tpu.memory_space<vmem>>) attributes {dimension_semantics = [#tpu.dimension_semantics<parallel>], iteration_bounds = array<i64: 1>, scalar_prefetch = 0 : i64, scratch_operands = 0 : i64, tpu.core_type = #tpu.core_type<tc>, window_params = [{transform_indices = @transform_0, window_bounds = array<i64: 16, 8>}, {transform_indices = @transform_1, window_bounds = array<i64: 16, 1>}, {pipeline_mode = #tpu.pipeline_mode<synchronous>, transform_indices = @transform_2, window_bounds = array<i64: 8, 128>}, {pipeline_mode = #tpu.pipeline_mode<synchronous>, transform_indices = @transform_3, window_bounds = array<i64: 128, 128>}, {pipeline_mode = #tpu.pipeline_mode<synchronous>, transform_indices = @transform_4, window_bounds = array<i64: 1, 128>}, {pipeline_mode = #tpu.pipeline_mode<synchronous>, transform_indices = @transform_5, window_bounds = array<i64: 128, 128>}, {pipeline_mode = #tpu.pipeline_mode<synchronous>, transform_indices = @transform_6, window_bounds = array<i64: 1, 128>}, {pipeline_mode = #tpu.pipeline_mode<synchronous>, transform_indices = @transform_7, window_bounds = array<i64: 128, 128>}, {pipeline_mode = #tpu.pipeline_mode<synchronous>, transform_indices = @transform_8, window_bounds = array<i64: 1, 128>}, {transform_indices = @transform_9, window_bounds = array<i64: 16, 128>}]} {
    %c0 = arith.constant 0 : index
    %c0_0 = arith.constant 0 : index
    %0 = vector.load %arg1[%c0, %c0_0] : memref<16x8xf32, #tpu.memory_space<vmem>>, vector<16x8xf32>
    %cst = arith.constant 0.000000e+00 : f32
    %1 = vector.broadcast %cst : f32 to vector<16x128xf32>
    %2 = vector.extract_strided_slice %0 {offsets = [0, 0], sizes = [16, 1], strides = [1, 1]} : vector<16x8xf32> to vector<16x1xf32>
    %c0_1 = arith.constant 0 : index
    %c0_2 = arith.constant 0 : index
    %3 = vector.load %arg3[%c0_1, %c0_2] : memref<8x128xf32, #tpu.memory_space<vmem>>, vector<1x128xf32>
    %4 = vector.broadcast %2 : vector<16x1xf32> to vector<16x128xf32>
    %5 = vector.broadcast %3 : vector<1x128xf32> to vector<16x128xf32>
    %6 = arith.mulf %4, %5 : vector<16x128xf32>
    %7 = arith.addf %1, %6 : vector<16x128xf32>
    %8 = vector.extract_strided_slice %0 {offsets = [0, 1], sizes = [16, 1], strides = [1, 1]} : vector<16x8xf32> to vector<16x1xf32>
    %c1 = arith.constant 1 : index
    %c0_3 = arith.constant 0 : index
    %9 = vector.load %arg3[%c1, %c0_3] : memref<8x128xf32, #tpu.memory_space<vmem>>, vector<1x128xf32>
    %10 = vector.broadcast %8 : vector<16x1xf32> to vector<16x128xf32>
    %11 = vector.broadcast %9 : vector<1x128xf32> to vector<16x128xf32>
    %12 = arith.mulf %10, %11 : vector<16x128xf32>
    %13 = arith.addf %7, %12 : vector<16x128xf32>
    %14 = vector.extract_strided_slice %0 {offsets = [0, 2], sizes = [16, 1], strides = [1, 1]} : vector<16x8xf32> to vector<16x1xf32>
    %c2 = arith.constant 2 : index
    %c0_4 = arith.constant 0 : index
    %15 = vector.load %arg3[%c2, %c0_4] : memref<8x128xf32, #tpu.memory_space<vmem>>, vector<1x128xf32>
    %16 = vector.broadcast %14 : vector<16x1xf32> to vector<16x128xf32>
    %17 = vector.broadcast %15 : vector<1x128xf32> to vector<16x128xf32>
    %18 = arith.mulf %16, %17 : vector<16x128xf32>
    %19 = arith.addf %13, %18 : vector<16x128xf32>
    %20 = vector.extract_strided_slice %0 {offsets = [0, 3], sizes = [16, 1], strides = [1, 1]} : vector<16x8xf32> to vector<16x1xf32>
    %c3 = arith.constant 3 : index
    %c0_5 = arith.constant 0 : index
    %21 = vector.load %arg3[%c3, %c0_5] : memref<8x128xf32, #tpu.memory_space<vmem>>, vector<1x128xf32>
    %22 = vector.broadcast %20 : vector<16x1xf32> to vector<16x128xf32>
    %23 = vector.broadcast %21 : vector<1x128xf32> to vector<16x128xf32>
    %24 = arith.mulf %22, %23 : vector<16x128xf32>
    %25 = arith.addf %19, %24 : vector<16x128xf32>
    %26 = vector.extract_strided_slice %0 {offsets = [0, 4], sizes = [16, 1], strides = [1, 1]} : vector<16x8xf32> to vector<16x1xf32>
    %c4 = arith.constant 4 : index
    %c0_6 = arith.constant 0 : index
    %27 = vector.load %arg3[%c4, %c0_6] : memref<8x128xf32, #tpu.memory_space<vmem>>, vector<1x128xf32>
    %28 = vector.broadcast %26 : vector<16x1xf32> to vector<16x128xf32>
    %29 = vector.broadcast %27 : vector<1x128xf32> to vector<16x128xf32>
    %30 = arith.mulf %28, %29 : vector<16x128xf32>
    %31 = arith.addf %25, %30 : vector<16x128xf32>
    %32 = vector.extract_strided_slice %0 {offsets = [0, 5], sizes = [16, 1], strides = [1, 1]} : vector<16x8xf32> to vector<16x1xf32>
    %c5 = arith.constant 5 : index
    %c0_7 = arith.constant 0 : index
    %33 = vector.load %arg3[%c5, %c0_7] : memref<8x128xf32, #tpu.memory_space<vmem>>, vector<1x128xf32>
    %34 = vector.broadcast %32 : vector<16x1xf32> to vector<16x128xf32>
    %35 = vector.broadcast %33 : vector<1x128xf32> to vector<16x128xf32>
    %36 = arith.mulf %34, %35 : vector<16x128xf32>
    %37 = arith.addf %31, %36 : vector<16x128xf32>
    %38 = vector.extract_strided_slice %0 {offsets = [0, 6], sizes = [16, 1], strides = [1, 1]} : vector<16x8xf32> to vector<16x1xf32>
    %c6 = arith.constant 6 : index
    %c0_8 = arith.constant 0 : index
    %39 = vector.load %arg3[%c6, %c0_8] : memref<8x128xf32, #tpu.memory_space<vmem>>, vector<1x128xf32>
    %40 = vector.broadcast %38 : vector<16x1xf32> to vector<16x128xf32>
    %41 = vector.broadcast %39 : vector<1x128xf32> to vector<16x128xf32>
    %42 = arith.mulf %40, %41 : vector<16x128xf32>
    %43 = arith.addf %37, %42 : vector<16x128xf32>
    %44 = vector.extract_strided_slice %0 {offsets = [0, 7], sizes = [16, 1], strides = [1, 1]} : vector<16x8xf32> to vector<16x1xf32>
    %c7 = arith.constant 7 : index
    %c0_9 = arith.constant 0 : index
    %45 = vector.load %arg3[%c7, %c0_9] : memref<8x128xf32, #tpu.memory_space<vmem>>, vector<1x128xf32>
    %46 = vector.broadcast %44 : vector<16x1xf32> to vector<16x128xf32>
    %47 = vector.broadcast %45 : vector<1x128xf32> to vector<16x128xf32>
    %48 = arith.mulf %46, %47 : vector<16x128xf32>
    %49 = arith.addf %43, %48 : vector<16x128xf32>
    %c0_10 = arith.constant 0 : index
    %c0_11 = arith.constant 0 : index
    %50 = vector.load %arg2[%c0_10, %c0_11] : memref<16x1xi32, #tpu.memory_space<vmem>>, vector<16x1xi32>
    %51 = tpu.iota {dimensions = array<i32: 1>} : vector<16x128xi32>
    %52 = vector.broadcast %50 : vector<16x1xi32> to vector<16x128xi32>
    %53 = arith.cmpi eq, %51, %52 : vector<16x128xi32>
    %54 = arith.extui %53 : vector<16x128xi1> to vector<16x128xi32>
    %55 = arith.sitofp %54 : vector<16x128xi32> to vector<16x128xf32>
    %56 = arith.truncf %55 : vector<16x128xf32> to vector<16x128xbf16>
    %c0_12 = arith.constant 0 : index
    %c0_13 = arith.constant 0 : index
    %57 = vector.load %arg4[%c0_12, %c0_13] : memref<128x128xbf16, #tpu.memory_space<vmem>>, vector<128x128xbf16>
    %cst_14 = arith.constant dense<0.000000e+00> : vector<16x128xf32>
    %58 = tpu.matmul %56, %57, %cst_14 {dimension_numbers = #tpu.dot_dimension_numbers<[1], [0], [0], [1], [0, 0, 1, 1], [], []>} : vector<16x128xbf16>, vector<128x128xbf16>, vector<16x128xf32> -> vector<16x128xf32>
    %59 = arith.addf %49, %58 : vector<16x128xf32>
    %c0_15 = arith.constant 0 : index
    %c0_16 = arith.constant 0 : index
    %60 = vector.load %arg5[%c0_15, %c0_16] : memref<1x128xf32, #tpu.memory_space<vmem>>, vector<1x128xf32>
    %61 = vector.broadcast %60 : vector<1x128xf32> to vector<16x128xf32>
    %62 = arith.addf %59, %61 : vector<16x128xf32>
    %cst_17 = arith.constant 0.000000e+00 : f32
    %63 = vector.broadcast %cst_17 : f32 to vector<16x128xf32>
    %64 = arith.maximumf %62, %63 : vector<16x128xf32>
    %65 = arith.truncf %64 : vector<16x128xf32> to vector<16x128xbf16>
    %c0_18 = arith.constant 0 : index
    %c0_19 = arith.constant 0 : index
    %66 = vector.load %arg6[%c0_18, %c0_19] : memref<128x128xbf16, #tpu.memory_space<vmem>>, vector<128x128xbf16>
    %cst_20 = arith.constant dense<0.000000e+00> : vector<16x128xf32>
    %67 = tpu.matmul %65, %66, %cst_20 {dimension_numbers = #tpu.dot_dimension_numbers<[1], [0], [0], [1], [0, 0, 1, 1], [], []>} : vector<16x128xbf16>, vector<128x128xbf16>, vector<16x128xf32> -> vector<16x128xf32>
    %c0_21 = arith.constant 0 : index
    %c0_22 = arith.constant 0 : index
    %68 = vector.load %arg7[%c0_21, %c0_22] : memref<1x128xf32, #tpu.memory_space<vmem>>, vector<1x128xf32>
    %69 = vector.broadcast %68 : vector<1x128xf32> to vector<16x128xf32>
    %70 = arith.addf %67, %69 : vector<16x128xf32>
    %cst_23 = arith.constant 0.000000e+00 : f32
    %71 = vector.broadcast %cst_23 : f32 to vector<16x128xf32>
    %72 = arith.maximumf %70, %71 : vector<16x128xf32>
    %73 = arith.truncf %72 : vector<16x128xf32> to vector<16x128xbf16>
    %c0_24 = arith.constant 0 : index
    %c0_25 = arith.constant 0 : index
    %74 = vector.load %arg8[%c0_24, %c0_25] : memref<128x128xbf16, #tpu.memory_space<vmem>>, vector<128x128xbf16>
    %cst_26 = arith.constant dense<0.000000e+00> : vector<16x128xf32>
    %75 = tpu.matmul %73, %74, %cst_26 {dimension_numbers = #tpu.dot_dimension_numbers<[1], [0], [0], [1], [0, 0, 1, 1], [], []>} : vector<16x128xbf16>, vector<128x128xbf16>, vector<16x128xf32> -> vector<16x128xf32>
    %c0_27 = arith.constant 0 : index
    %c0_28 = arith.constant 0 : index
    %76 = vector.load %arg9[%c0_27, %c0_28] : memref<1x128xf32, #tpu.memory_space<vmem>>, vector<1x128xf32>
    %77 = vector.broadcast %76 : vector<1x128xf32> to vector<16x128xf32>
    %78 = arith.addf %75, %77 : vector<16x128xf32>
    %79 = vector.extract_strided_slice %78 {offsets = [0, 9], sizes = [16, 1], strides = [1, 1]} : vector<16x128xf32> to vector<16x1xf32>
    %80 = arith.negf %79 : vector<16x1xf32>
    %81 = math.exp %80 : vector<16x1xf32>
    %cst_29 = arith.constant 1.000000e+00 : f32
    %82 = vector.broadcast %cst_29 : f32 to vector<16x1xf32>
    %83 = arith.addf %82, %81 : vector<16x1xf32>
    %84 = arith.divf %82, %83 : vector<16x1xf32>
    %85 = tpu.iota {dimensions = array<i32: 1>} : vector<1x128xi32>
    %c9_i32 = arith.constant 9 : i32
    %86 = vector.broadcast %c9_i32 : i32 to vector<1x128xi32>
    %87 = arith.cmpi eq, %85, %86 : vector<1x128xi32>
    %88 = vector.shape_cast %87 : vector<1x128xi1> to vector<1x128xi1>
    %89 = vector.broadcast %88 : vector<1x128xi1> to vector<16x128xi1>
    %90 = vector.shape_cast %84 : vector<16x1xf32> to vector<16x1xf32>
    %91 = vector.broadcast %90 : vector<16x1xf32> to vector<16x128xf32>
    %92 = arith.select %89, %91, %78 : vector<16x128xi1>, vector<16x128xf32>
    %93 = arith.truncf %92 : vector<16x128xf32> to vector<16x128xbf16>
    %c0_30 = arith.constant 0 : index
    %c0_31 = arith.constant 0 : index
    %94 = vector.load %arg10[%c0_30, %c0_31] : memref<16x128xbf16, #tpu.memory_space<vmem>>, vector<16x128xbf16>
    tpu.vector_store %arg10[%c0_30, %c0_31], %93 {strides = array<i32>} : memref<16x128xbf16, #tpu.memory_space<vmem>>, vector<16x128xbf16>,
    return
  }
  func.func @transform_0(%arg0: i32) -> (i32, i32) {
    %c0_i32 = arith.constant 0 : i32
    %c0_i32_0 = arith.constant 0 : i32
    return %arg0, %c0_i32 : i32, i32
  }
  func.func @transform_1(%arg0: i32) -> (i32, i32) {
    %c0_i32 = arith.constant 0 : i32
    %c0_i32_0 = arith.constant 0 : i32
    return %arg0, %c0_i32 : i32, i32
  }
  func.func @transform_2(%arg0: i32) -> (i32, i32) {
    %c0_i32 = arith.constant 0 : i32
    %c0_i32_0 = arith.constant 0 : i32
    %c0_i32_1 = arith.constant 0 : i32
    return %c0_i32, %c0_i32_0 : i32, i32
  }
  func.func @transform_3(%arg0: i32) -> (i32, i32) {
    %c0_i32 = arith.constant 0 : i32
    %c0_i32_0 = arith.constant 0 : i32
    %c0_i32_1 = arith.constant 0 : i32
    return %c0_i32, %c0_i32_0 : i32, i32
  }
  func.func @transform_4(%arg0: i32) -> (i32, i32) {
    %c0_i32 = arith.constant 0 : i32
    %c0_i32_0 = arith.constant 0 : i32
    %c0_i32_1 = arith.constant 0 : i32
    return %c0_i32, %c0_i32_0 : i32, i32
  }
  func.func @transform_5(%arg0: i32) -> (i32, i32) {
    %c0_i32 = arith.constant 0 : i32
    %c0_i32_0 = arith.constant 0 : i32
    %c0_i32_1 = arith.constant 0 : i32
    return %c0_i32, %c0_i32_0 : i32, i32
  }
  func.func @transform_6(%arg0: i32) -> (i32, i32) {
    %c0_i32 = arith.constant 0 : i32
    %c0_i32_0 = arith.constant 0 : i32
    %c0_i32_1 = arith.constant 0 : i32
    return %c0_i32, %c0_i32_0 : i32, i32
  }
  func.func @transform_7(%arg0: i32) -> (i32, i32) {
    %c0_i32 = arith.constant 0 : i32
    %c0_i32_0 = arith.constant 0 : i32
    %c0_i32_1 = arith.constant 0 : i32
    return %c0_i32, %c0_i32_0 : i32, i32
  }
  func.func @transform_8(%arg0: i32) -> (i32, i32) {
    %c0_i32 = arith.constant 0 : i32
    %c0_i32_0 = arith.constant 0 : i32
    %c0_i32_1 = arith.constant 0 : i32
    return %c0_i32, %c0_i32_0 : i32, i32
  }
  func.func @transform_9(%arg0: i32) -> (i32, i32) {
    %c0_i32 = arith.constant 0 : i32
    %c0_i32_0 = arith.constant 0 : i32
    return %arg0, %c0_i32 : i32, i32
  }
}

</mosaic_0001>

<bundles_post_ra>
// kernel: tpu_custom_call.1
= control target key start
LH: loop header
LB: loop body
LE: loop exit
PB: predicated region body
PF: predicated region fallthrough
CT: control target
= control target key end

     0   :  { %14 = vsyncpa [#allocation3], 0  ;;  %s1138_s0 = inlined_call_operand.vmem [shape: f32[16,8], index: 0, kind: input, shape index: {}]   ;;  %s1139_s1 = inlined_call_operand.vmem [shape: s32[16,1], index: 1, kind: input, shape index: {}]   ;;  %s1140_s2 = inlined_call_operand.hbm [shape: f32[8,128], index: 2, kind: input, shape index: {}]   ;;  %s1141_s3 = inlined_call_operand.hbm [shape: bf16[128,128], index: 3, kind: input, shape index: {}]   ;;  %s1142_s4 = inlined_call_operand.vmem [shape: f32[1,128], index: 4, kind: input, shape index: {}]   ;;  %s1143_s5 = inlined_call_operand.hbm [shape: bf16[128,128], index: 5, kind: input, shape index: {}]   ;;  %s1144_s6 = inlined_call_operand.vmem [shape: f32[1,128], index: 6, kind: input, shape index: {}]   ;;  %s1145_s7 = inlined_call_operand.vmem [shape: bf16[128,128], index: 7, kind: input, shape index: {}]   ;;  %s1146_s8 = inlined_call_operand.vmem [shape: f32[1,128], index: 8, kind: input, shape index: {}]   ;;  %s1147_s9 = inlined_call_operand.hbm [shape: bf16[16,128], index: 9, kind: output, shape index: {}]  }
   0x1   :  { %15 = vsyncpa [#allocation6], 0 }
   0x2   :  { %16 = vsyncpa [#allocation4], 0  ;;  %s933_s30 = smov [#allocation5]   ;;  %s839_s13 = scalar_lea.hbm %s1141_s3, 1024 }
   0x3   :  { %s36_s10 = sshll.u32 %s933_s30, 4  ;;  %p840_p0 = scmp.ne.s32.totalorder %s1141_s3, %s839_s13  ;;  %s37_s10 = int_to_ptr.vmem [resolvable:$true] %s36_s10 }
   0x4   :  { %p843_p1 = scmp.lt.u32.totalorder %s839_s13, %s1141_s3 }
   0x6   :  { %p845_p2 = pnand %p843_p1, %p840_p0 }
   0x8   :  { %848 = shalt.err (!%p845_p2)
}
   0x9   :  { %s849_s18 = scalar_lea.vmem %s37_s10, 1024  ;;  %p854_p4 = scmp.lt.s32.totalorder %s37_s10, %s37_s10 }
   0xa   :  { %p850_p3 = scmp.ne.s32.totalorder %s37_s10, %s849_s18  ;;  %p855_p5 = scmp.lt.s32.totalorder %s849_s18, %s849_s18 }
   0xc   :  { %p856_p6 = por %p855_p5, %p854_p4 }
   0xe   :  { %p857_p7 = pnand %p856_p6, %p850_p3 }
  0x10   :  { %860 = shalt.err (!%p857_p7)
}
  0x11   :  { %s934_s19 = smov 64   ;;  %s935_s20 = smov 4  }
  0x12   :  { %42 = dma.hbm_to_vmem [thread:$0]  %s1141_s3, 1024, %s37_s10, [#allocation6], %s934_s19, %s934_s19, %s935_s20  }
  0x13   :  { %s936_s23 = smov [#allocation2]   ;;  %s937_s25 = smov [#allocation7]  }
  0x14   :  { %s27_s24 = sshll.u32 %s936_s23, 4  ;;  %s50_s26 = sshll.u32 %s937_s25, 4  ;;  %s28_s24 = int_to_ptr.vmem [resolvable:$true] %s27_s24  ;;  %s51_s26 = int_to_ptr.vmem [resolvable:$true] %s50_s26 }
  0x15   :  { %s861_s29 = scalar_lea.hbm %s1140_s2, 128 }
  0x16   :  { %p862_p8 = scmp.ne.s32.totalorder %s1140_s2, %s861_s29  ;;  %p865_p9 = scmp.lt.u32.totalorder %s861_s29, %s1140_s2 }
  0x18   :  { %p867_p10 = pnand %p865_p9, %p862_p8 }
  0x1a   :  { %870 = shalt.err (!%p867_p10)
}
  0x1b   :  { %s871_s3 = scalar_lea.vmem %s28_s24, 128  ;;  %p876_p12 = scmp.lt.s32.totalorder %s28_s24, %s28_s24 }
  0x1c   :  { %p872_p11 = scmp.ne.s32.totalorder %s28_s24, %s871_s3  ;;  %p877_p13 = scmp.lt.s32.totalorder %s871_s3, %s871_s3 }
  0x1e   :  { %p878_p0 = por %p877_p13, %p876_p12 }
  0x20   :  { %p879_p1 = pnand %p878_p0, %p872_p11 }
  0x22   :  { %882 = shalt.err (!%p879_p1)
}
  0x23   :  { %30 = dma.hbm_to_vmem [thread:$0]  %s1140_s2, 128, %s28_s24, [#allocation3]  }
  0x24   :  { %s883_s17 = scalar_lea.hbm %s1143_s5, 1024 }
  0x25   :  { %p884_p2 = scmp.ne.s32.totalorder %s1143_s5, %s883_s17  ;;  %p887_p3 = scmp.lt.u32.totalorder %s883_s17, %s1143_s5 }
  0x27   :  { %p889_p4 = pnand %p887_p3, %p884_p2 }
  0x29   :  { %892 = shalt.err (!%p889_p4)
}
  0x2a   :  { %s893_s25 = scalar_lea.vmem %s51_s26, 1024  ;;  %p898_p6 = scmp.lt.s32.totalorder %s51_s26, %s51_s26 }
  0x2b   :  { %p894_p5 = scmp.ne.s32.totalorder %s51_s26, %s893_s25  ;;  %p899_p7 = scmp.lt.s32.totalorder %s893_s25, %s893_s25 }
  0x2d   :  { %p900_p8 = por %p899_p7, %p898_p6 }
  0x2f   :  { %p901_p9 = pnand %p900_p8, %p894_p5 }
  0x31   :  { %904 = shalt.err (!%p901_p9)
}
  0x32   :  { %56 = dma.hbm_to_vmem [thread:$0]  %s1143_s5, 1024, %s51_s26, [#allocation6], %s934_s19, %s934_s19, %s935_s20  }
  0x33   :  { %927 = dma.done.wait [#allocation3], 128  }
  0x34   :  { %928 = vsyncadd [#allocation3], 4294967168 }
  0x35   :  { %929 = dma.done.wait [#allocation6], 2048  }
  0x36   :  { %930 = vsyncadd [#allocation6], 4294965248  ;;  %v938_v0 = vmov 0   ;;  %v939_v1 = vmov 0.0   ;;  %v213_v2 = vld [vmem:[%s1139_s1] sm:$0xff]  ;;  %v807_v3 = vld [vmem:[#allocation5] sm:$0xff]   ;;  %v215_v26 = vlaneseq }
  0x37   :  { %786 = vset.pattern.permute.xlu0 %v938_v0  ;;  %708 = vmatprep.subr.bf16.mxu0 %v939_v1  ;;  %v214_v4 = vld [vmem:[%s1139_s1 + $0x8] sm:$0xff]  ;;  %v808_v5 = vld [vmem:[#allocation5 + $0x8] sm:$0xff]   ;;  %vm940_vm0 = vmmov 0   ;;  %v809_v6 = vld [vmem:[#allocation5 + $0x10] sm:$0xff]   ;;  %v941_v8 = vmov 1   ;;  %v942_v12 = vmov 2  }
  0x38   :  { %787 = vset.pattern.permute.xlu1 %v938_v0  ;;  %728 = vmatprep.subr.bf16.mxu1 %v939_v1  ;;  %v73_v7 = vld [vmem:[%s1138_s0] sm:$0xff]  ;;  %v74_v10 = vld [vmem:[%s1138_s0 + $0x8] sm:$0xff]  ;;  %v812_v13 = vld [vmem:[#allocation5 + $0x28] sm:$0xff]   ;;  %v943_v14 = vmov 4   ;;  %v944_v16 = vmov 5   ;;  %v945_v18 = vmov 3  }
  0x39   :  { %218 = vperm.xlu0 %786, %v213_v2   ;;  %709 = vmatpush3.bf16.msra.mxu0 %v807_v3  ;;  %v810_v9 = vld [vmem:[#allocation5 + $0x18] sm:$0xff]   ;;  %v811_v11 = vld [vmem:[#allocation5 + $0x20] sm:$0xff]   ;;  %v813_v15 = vld [vmem:[#allocation5 + $0x30] sm:$0xff]   ;;  %v946_v19 = vmov 7   ;;  %v947_v20 = vmov 6   ;;  %v1074_v28 = vand.u32 127, %v215_v26 }
  0x3a   :  { %710 = vmatprep.subr.bf16.mxu0 %v939_v1  ;;  %724 = vmatprep.mubr.msk.bf16.mxu0 %vm940_vm0, %v939_v1  ;;  %v814_v17 = vld [vmem:[#allocation5 + $0x38] sm:$0xff]   ;;  %v815_v21 = vld [vmem:[#allocation7] sm:$0xff]   ;;  %v816_v22 = vld [vmem:[#allocation7 + $0x8] sm:$0xff]   ;;  %v948_v30 = vmov 1.0|1.0  }
  0x3b   :  { %744 = vmatprep.mubr.msk.bf16.mxu1 %vm940_vm0, %v939_v1  ;;  %78 = vperm.xlu1 %787, %v73_v7   ;;  %v817_v23 = vld [vmem:[#allocation7 + $0x10] sm:$0xff]   ;;  %v818_v24 = vld [vmem:[#allocation7 + $0x18] sm:$0xff]   ;;  %v819_v25 = vld [vmem:[#allocation7 + $0x20] sm:$0xff]   ;;  %vm588_vm4 = vcmp.eq.s32.totalorder %v1074_v28, 9 }
  0x3c   :  { %729 = vmatpush3.bf16.msra.mxu1 %v815_v21  ;;  %v820_v31 = vld [vmem:[#allocation7 + $0x28] sm:$0xff]   ;;  %v821_v32 = vld [vmem:[#allocation7 + $0x30] sm:$0xff]   ;;  %v822_v33 = vld [vmem:[#allocation7 + $0x38] sm:$0xff]  }
  0x3d   :  { %221 = vperm.xlu0 %786, %v214_v4   ;;  %711 = vmatpush3.bf16.msra.mxu0 %v808_v5  ;;  %v823_v34 = vld [vmem:[%s1145_s7] sm:$0xff]   ;;  %v824_v35 = vld [vmem:[%s1145_s7 + $0x8] sm:$0xff]   ;;  %v825_v36 = vld [vmem:[%s1145_s7 + $0x10] sm:$0xff]  }
  0x3e   :  { %712 = vmatprep.subr.bf16.mxu0 %v939_v1  ;;  %730 = vmatprep.subr.bf16.mxu1 %v939_v1  ;;  %v826_v37 = vld [vmem:[%s1145_s7 + $0x18] sm:$0xff]   ;;  %v827_v38 = vld [vmem:[%s1145_s7 + $0x20] sm:$0xff]   ;;  %v828_v39 = vld [vmem:[%s1145_s7 + $0x28] sm:$0xff]  }
  0x3f   :  { %83 = vperm.xlu1 %787, %v74_v10   ;;  %v631_v46 = vld [vmem:[#allocation2] ss:$0 sm:$0xff]  ;;  %v632_v47 = vld [vmem:[#allocation2 + $0x1] ss:$0 sm:$0xff]  ;;  %v633_v52 = vld [vmem:[#allocation2 + $0x2] ss:$0 sm:$0xff] }
  0x40   :  { %731 = vmatpush3.bf16.msra.mxu1 %v816_v22  ;;  %v634_v58 = vld [vmem:[#allocation2 + $0x3] ss:$0 sm:$0xff]  ;;  %v635_v0 = vld [vmem:[#allocation2 + $0x4] ss:$0 sm:$0xff] }
  0x41   :  { %788 = vset.pattern.permute.xlu0 %v941_v8  ;;  %713 = vmatpush3.bf16.msra.mxu0 %v809_v6 }
  0x42   :  { %96 = vperm.xlu0 %788, %v73_v7   ;;  %714 = vmatprep.subr.bf16.mxu0 %v939_v1 }
  0x43   :  { %789 = vset.pattern.permute.xlu1 %v941_v8  ;;  %732 = vmatprep.subr.bf16.mxu1 %v939_v1  ;;  %v636_v8 = vld [vmem:[#allocation2 + $0x5] ss:$0 sm:$0xff] }
  0x44   :  { %100 = vperm.xlu1 %789, %v74_v10   ;;  %733 = vmatpush3.bf16.msra.mxu1 %v817_v23 }
  0x45   :  { %715 = vmatpush3.bf16.msra.mxu0 %v810_v9  ;;  %734 = vmatprep.subr.bf16.mxu1 %v939_v1 }
  0x46   :  { %791 = vset.pattern.permute.xlu0 %v942_v12  ;;  %716 = vmatprep.subr.bf16.mxu0 %v939_v1 }
  0x47   :  { %117 = vperm.xlu0 %791, %v74_v10  }
  0x48   :  { %790 = vset.pattern.permute.xlu1 %v942_v12  ;;  %735 = vmatpush3.bf16.msra.mxu1 %v818_v24 }
  0x49   :  { %717 = vmatpush3.bf16.msra.mxu0 %v811_v11  ;;  %113 = vperm.xlu1 %790, %v73_v7  }
  0x4a   :  { %718 = vmatprep.subr.bf16.mxu0 %v939_v1  ;;  %736 = vmatprep.subr.bf16.mxu1 %v939_v1 }
  0x4b   :  { %793 = vset.pattern.permute.xlu0 %v943_v14 }
  0x4c   :  { %147 = vperm.xlu0 %793, %v73_v7   ;;  %737 = vmatpush3.bf16.msra.mxu1 %v819_v25 }
  0x4d   :  { %719 = vmatpush3.bf16.msra.mxu0 %v812_v13  ;;  %792 = vset.pattern.permute.xlu1 %v945_v18 }
  0x4e   :  { %720 = vmatprep.subr.bf16.mxu0 %v939_v1  ;;  %130 = vperm.xlu1 %792, %v73_v7  }
  0x4f   :  { %738 = vmatprep.subr.bf16.mxu1 %v939_v1 }
  0x50   :  { %796 = vset.pattern.permute.xlu0 %v944_v16  ;;  %739 = vmatpush3.bf16.msra.mxu1 %v820_v31 }
  0x51   :  { %168 = vperm.xlu0 %796, %v74_v10   ;;  %721 = vmatpush3.bf16.msra.mxu0 %v813_v15 }
  0x52   :  { %722 = vmatprep.subr.bf16.mxu0 %v939_v1  ;;  %134 = vperm.xlu1 %792, %v74_v10  }
  0x53   :  { %740 = vmatprep.subr.bf16.mxu1 %v939_v1 }
  0x54   :  { %741 = vmatpush3.bf16.msra.mxu1 %v821_v32  ;;  %v651_v32 = vld [vmem:[%s1142_s4] ss:$0 sm:$0xff] }
  0x55   :  { %798 = vset.pattern.permute.xlu0 %v946_v19  ;;  %723 = vmatpush3.bf16.msra.mxu0 %v814_v17 }
  0x56   :  { %198 = vperm.xlu0 %798, %v73_v7   ;;  %748 = vmatprep.subr.bf16.mxu0 %v939_v1 }
  0x57   :  { %794 = vset.pattern.permute.xlu1 %v943_v14  ;;  %742 = vmatprep.subr.bf16.mxu1 %v939_v1  ;;  %v637_v14 = vld [vmem:[#allocation2 + $0x6] ss:$0 sm:$0xff] }
  0x58   :  { %151 = vperm.xlu1 %794, %v74_v10   ;;  %743 = vmatpush3.bf16.msra.mxu1 %v822_v33 }
  0x5c   :  { %795 = vset.pattern.permute.xlu1 %v944_v16 }
  0x5d   :  { %164 = vperm.xlu1 %795, %v73_v7  }
  0x61   :  { %797 = vset.pattern.permute.xlu1 %v947_v20  ;;  %v638_v20 = vld [vmem:[#allocation2 + $0x7] ss:$0 sm:$0xff] }
  0x62   :  { %181 = vperm.xlu1 %797, %v73_v7  }
  0x66   :  { %185 = vperm.xlu1 %797, %v74_v10  }
  0x6a   :  { %799 = vset.pattern.permute.xlu1 %v946_v19 }
  0x6b   :  { %202 = vperm.xlu1 %799, %v74_v10  }
  0xb8   :  { %v219_v27 = vpop.permute.xlu0 %218 }
  0xb9   :  { %vm223_vm1 = vcmp.eq.s32.totalorder %v1074_v28, %v219_v27 }
  0xba   :  { %v79_v40 = vpop.permute.xlu1 %78 }
  0xbb   :  { %v90_v50 = vmul.f32 %v631_v46, %v79_v40 }
  0xbc   :  { %v222_v29 = vpop.permute.xlu0 %221 }
  0xbd   :  { %vm224_vm2 = vcmp.eq.s32.totalorder %v1074_v28, %v222_v29 }
  0xbe   :  { %vm649_vm3 = vmpackc.low %vm224_vm2, %vm223_vm1  ;;  %v84_v41 = vpop.permute.xlu1 %83 }
  0xbf   :  { %725 = vmatmul.mubr.msk.bf16.vlgmr.msra.gmra.mrb[0].mxu0 %vm649_vm3, %v948_v30  ;;  %v91_v53 = vmul.f32 %v631_v46, %v84_v41  ;;  %v652_v46 = vld [vmem:[%s1144_s6] ss:$0 sm:$0xff]  ;;  %s950_s6 = smov [#allocation8]  }
  0xc0   :  { %764 = vmatprep.mubr.msk.bf16.mxu0 %vm940_vm0, %v939_v1  ;;  %749 = vmatpush3.bf16.msra.mxu0 %v823_v34 }
  0xc1   :  { %750 = vmatprep.subr.bf16.mxu0 %v939_v1  ;;  %v97_v48 = vpop.permute.xlu0 %96 }
  0xc2   :  { %v107_v51 = vmul.f32 %v632_v47, %v97_v48 }
  0xc3   :  { %v101_v42 = vpop.permute.xlu1 %100 }
  0xc4   :  { %751 = vmatpush3.bf16.msra.mxu0 %v824_v35  ;;  %v108_v54 = vmul.f32 %v632_v47, %v101_v42  ;;  %v109_v57 = vadd.f32 %v107_v51, %v90_v50 }
  0xc5   :  { %752 = vmatprep.subr.bf16.mxu0 %v939_v1 }
  0xc6   :  { %v118_v55 = vpop.permute.xlu0 %117  ;;  %v110_v60 = vadd.f32 %v108_v54, %v91_v53 }
  0xc7   :  { %v125_v61 = vmul.f32 %v633_v52, %v118_v55 }
  0xc8   :  { %753 = vmatpush3.bf16.msra.mxu0 %v825_v36  ;;  %v114_v43 = vpop.permute.xlu1 %113 }
  0xc9   :  { %754 = vmatprep.subr.bf16.mxu0 %v939_v1  ;;  %v124_v56 = vmul.f32 %v633_v52, %v114_v43  ;;  %v127_v4 = vadd.f32 %v125_v61, %v110_v60 }
  0xcb   :  { %v126_v63 = vadd.f32 %v124_v56, %v109_v57  ;;  %v148_v2 = vpop.permute.xlu0 %147  ;;  %v661_v56 = vld [vmem:[%s1146_s8] ss:$0 sm:$0xff]  ;;  %s618_s8 = sshll.u32 %s950_s6, 4  ;;  %s619_s8 = int_to_ptr.vmem [resolvable:$true] %s618_s8 }
  0xcc   :  { %755 = vmatpush3.bf16.msra.mxu0 %v826_v37  ;;  %v158_v7 = vmul.f32 %v635_v0, %v148_v2  ;;  %s905_s26 = scalar_lea.vmem %s619_s8, 128  ;;  %p910_p11 = scmp.lt.s32.totalorder %s619_s8, %s619_s8 }
  0xcd   :  { %756 = vmatprep.subr.bf16.mxu0 %v939_v1  ;;  %v131_v44 = vpop.permute.xlu1 %130  ;;  %p906_p10 = scmp.ne.s32.totalorder %s619_s8, %s905_s26  ;;  %p911_p12 = scmp.lt.s32.totalorder %s905_s26, %s905_s26 }
  0xce   :  { %v141_v62 = vmul.f32 %v634_v58, %v131_v44  ;;  %v829_v44 = vld [vmem:[%s1145_s7 + $0x30] sm:$0xff]  }
  0xcf   :  { %p912_p13 = por %p911_p12, %p910_p11 }
  0xd0   :  { %757 = vmatpush3.bf16.msra.mxu0 %v827_v38  ;;  %v143_v6 = vadd.f32 %v141_v62, %v126_v63  ;;  %v169_v11 = vpop.permute.xlu0 %168 }
  0xd1   :  { %758 = vmatprep.subr.bf16.mxu0 %v939_v1  ;;  %v135_v45 = vpop.permute.xlu1 %134  ;;  %v176_v17 = vmul.f32 %v636_v8, %v169_v11  ;;  %p913_p0 = pnand %p912_p13, %p906_p10 }
  0xd2   :  { %v142_v3 = vmul.f32 %v634_v58, %v135_v45  ;;  %v160_v13 = vadd.f32 %v158_v7, %v143_v6  ;;  %v830_v45 = vld [vmem:[%s1145_s7 + $0x38] sm:$0xff]  }
  0xd4   :  { %759 = vmatpush3.bf16.msra.mxu0 %v828_v39  ;;  %v144_v10 = vadd.f32 %v142_v3, %v127_v4 }
  0xd5   :  { %760 = vmatprep.subr.bf16.mxu0 %v939_v1  ;;  %v199_v21 = vpop.permute.xlu0 %198 }
  0xd6   :  { %v209_v26 = vmul.f32 %v638_v20, %v199_v21 }
  0xd7   :  { %v152_v49 = vpop.permute.xlu1 %151 }
  0xd8   :  { %v159_v9 = vmul.f32 %v635_v0, %v152_v49  ;;  %761 = vmatpush3.bf16.msra.mxu0 %v829_v44 }
  0xd9   :  { %762 = vmatprep.subr.bf16.mxu0 %v939_v1  ;;  %v949_v1 = vmov 9  }
  0xda   :  { %v161_v16 = vadd.f32 %v159_v9, %v144_v10  ;;  %800 = vset.pattern.permute.xlu1 %v949_v1  ;;  %806 = vset.pattern.permute.xlu0 %v949_v1 }
  0xdc   :  { %v165_v59 = vpop.permute.xlu1 %164  ;;  %v178_v22 = vadd.f32 %v176_v17, %v161_v16  ;;  %763 = vmatpush3.bf16.msra.mxu0 %v830_v45 }
  0xdd   :  { %v175_v12 = vmul.f32 %v636_v8, %v165_v59 }
  0xdf   :  { %v177_v18 = vadd.f32 %v175_v12, %v160_v13 }
  0xe1   :  { %v182_v5 = vpop.permute.xlu1 %181 }
  0xe2   :  { %v192_v19 = vmul.f32 %v637_v14, %v182_v5 }
  0xe4   :  { %v194_v25 = vadd.f32 %v192_v19, %v177_v18 }
  0xe5   :  { %v186_v15 = vpop.permute.xlu1 %185 }
  0xe6   :  { %v193_v23 = vmul.f32 %v637_v14, %v186_v15  ;;  %v211_v30 = vadd.f32 %v209_v26, %v194_v25 }
  0xe8   :  { %v195_v27 = vadd.f32 %v193_v23, %v178_v22 }
  0xea   :  { %v203_v24 = vpop.permute.xlu1 %202 }
  0xeb   :  { %v210_v29 = vmul.f32 %v638_v20, %v203_v24 }
  0xed   :  { %v212_v35 = vadd.f32 %v210_v29, %v195_v27 }
 0x192   :  { %v328_v31 = vpop.f32.mrb[0].mxu0 }
 0x193   :  { %v335_v33 = vadd.f32 %v328_v31, %v211_v30  ;;  %v726_v34 = vpop.f32.mrb[1].mxu0 }
 0x194   :  { %v331_v36 = vpop.f32.mrb[2].mxu0 }
 0x195   :  { %v344_v37 = vadd.f32 %v651_v32, %v335_v33  ;;  %v336_v38 = vadd.f32 %v331_v36, %v212_v35  ;;  %v727_v39 = vpop.f32.mrb[3].mxu0 }
 0x197   :  { %v345_v40 = vadd.f32 %v651_v32, %v336_v38  ;;  %v346_v41 = vmax.f32 %v344_v37, 0.0 }
 0x199   :  { %v347_v42 = vmax.f32 %v345_v40, 0.0 }
 0x19b   :  { %v348_v43 = vpack.c.bf16 %v347_v42, %v346_v41 }
 0x19d   :  { %745 = vmatmul.mubr.bf16.vlgmr.msra.gmra.mrb[0].mxu1 %v348_v43 }
 0x270   :  { %v454_v47 = vpop.f32.mrb[0].mxu1 }
 0x271   :  { %v455_v48 = vadd.f32 %v652_v46, %v454_v47  ;;  %v746_v49 = vpop.f32.mrb[1].mxu1 }
 0x272   :  { %v457_v50 = vpop.f32.mrb[2].mxu1 }
 0x273   :  { %v458_v51 = vadd.f32 %v652_v46, %v457_v50  ;;  %v747_v52 = vpop.f32.mrb[3].mxu1  ;;  %v461_v53 = vmax.f32 %v455_v48, 0.0 }
 0x275   :  { %v462_v54 = vmax.f32 %v458_v51, 0.0 }
 0x277   :  { %v463_v55 = vpack.c.bf16 %v462_v54, %v461_v53 }
 0x279   :  { %765 = vmatmul.mubr.bf16.vlgmr.msra.gmra.mrb[4].mxu0 %v463_v55 }
 0x34c   :  { %v569_v57 = vpop.f32.mrb[4].mxu0 }
 0x34d   :  { %v570_v58 = vadd.f32 %v661_v56, %v569_v57  ;;  %v766_v59 = vpop.f32.mrb[5].mxu0 }
 0x34e   :  { %v572_v60 = vpop.f32.mrb[6].mxu0 }
 0x34f   :  { %v670_v61 = vmul.f32 -1.442695, %v570_v58  ;;  %v573_v62 = vadd.f32 %v661_v56, %v572_v60  ;;  %v767_v63 = vpop.f32.mrb[7].mxu0 }
 0x351   :  { %831 = vpow2.f32 %v670_v61  ;;  %v671_v0 = vmul.f32 -1.442695, %v573_v62 }
 0x353   :  { %833 = vpow2.f32 %v671_v0 }
 0x35b   :  { %v832_v2 = vpop.eup %831 }
 0x35c   :  { %v582_v3 = vadd.f32 1.0, %v832_v2 }
 0x35d   :  { %v834_v4 = vpop.eup %833 }
 0x35e   :  { %v583_v5 = vadd.f32 1.0, %v834_v4  ;;  %835 = vrcp.f32 %v582_v3 }
 0x360   :  { %837 = vrcp.f32 %v583_v5 }
 0x368   :  { %v836_v6 = vpop.eup %835 }
 0x36a   :  { %v838_v7 = vpop.eup %837 }
 0x36b   :  { %v801_v8 = vpack.i.bf16 %v838_v7, %v836_v6 }
 0x36d   :  { %802 = vperm.xlu1 %800, %v801_v8  }
 0x3ec   :  { %v803_v9 = vpop.permute.xlu1 %802 }
 0x3ed   :  { %v805_v10 = vunpack.i.h.bf16 %v803_v9  ;;  %v804_v11 = vunpack.i.l.bf16 %v803_v9 }
 0x3ef   :  { %v601_v12 = vsel %vm588_vm4, %v804_v11, %v570_v58  ;;  %v602_v13 = vsel %vm588_vm4, %v805_v10, %v573_v62 }
 0x3f0   :  { %v679_v14 = vpack.c.bf16 %v602_v13, %v601_v12 }
 0x3f2   :  { %680 = vst [vmem:[#allocation8] sm:$0xff] %v679_v14  }
 0x3f3   :  { %916 = shalt.err (!%p913_p0)
}
 0x3f4   :  { %s917_s11 = scalar_lea.hbm %s1147_s9, 128 }
 0x3f5   :  { %p918_p1 = scmp.ne.s32.totalorder %s1147_s9, %s917_s11  ;;  %p921_p2 = scmp.lt.u32.totalorder %s917_s11, %s1147_s9 }
 0x3f7   :  { %p923_p3 = pnand %p921_p2, %p918_p1 }
 0x3f9   :  { %926 = shalt.err (!%p923_p3)
}
 0x3fa   :  { %624 = dma.vmem_to_hbm [thread:$0]  %s619_s8, 128, %s1147_s9, [#allocation4], %s934_s19, %s934_s19, %s935_s20  }
 0x3fb   :  { %931 = dma.done.wait [#allocation4], 128  }
 0x3fc   :  { %932 = vsyncadd [#allocation4], 4294967168 }
 0x3fd   :  { %628 = vsyncpa [#allocation3], 1 }
 0x3fe   :  { %629 = vsyncpa [#allocation6], 1 }
 0x3ff   :  { %630 = vsyncpa [#allocation4], 1 }

</bundles_post_ra>
